<compile_context>
chip_gen: v6e
topology: v6e:2x2x1
jax: 0.10.0
libtpu: 0.0.40
codegen_flags: <defaults>
</compile_context>

<pallas_src>
import functools

import jax
import jax.numpy as jnp
from jax.experimental import pallas as pl
from jax.experimental.pallas import tpu as pltpu

BN_EPS = 1e-5
LEAKY_SLOPE = 0.2  # GATConv default negative_slope
LANE = 128


def _round_up(v, m):
    return (v + m - 1) // m * m


# --------------------------------------------------------------------------------------
# Kernel
# --------------------------------------------------------------------------------------
def gnn_vae_kernel(
    # data
    x_ref, adj_ref, eps_ref, sel_ref,
    # fused weights / packed params
    w_enc_ref, w_gcn_ref, w_mulv_ref, w_dec1_ref, w_d2_ref, pvec_ref, bcol_ref,
    # outputs
    recon_ref, mulv_ref,
    *, hidden, latent, dec, e_pad, mpad,
):
    f32 = jnp.float32
    bf16 = jnp.bfloat16
    H, L, D = hidden, latent, dec

    pv = pvec_ref[...]                                   # [8, ppad] packed small params (f32)

    # ---------- GATConv(F -> H, heads=2, concat=False): fused wide bf16 matmul -----------
    # w_enc columns: [0.5*wgat0 | 0.5*wgat1 | W0@a_src0 | W0@a_dst0 | W1@a_src1 | W1@a_dst1]
    enc = jnp.dot(x_ref[...], w_enc_ref[...], preferred_element_type=f32)   # [N, 2H+4]

    # Stack the two heads on a leading dim so every reduction / exp / reciprocal is
    # issued once over [2, N, N] instead of twice over [N, N].
    a_dst = jnp.stack([enc[:, 2 * H + 1:2 * H + 2],
                       enc[:, 2 * H + 3:2 * H + 4]], axis=0)                # [2, N, 1]
    a_srcT = jnp.stack([jnp.transpose(enc[:, 2 * H:2 * H + 1], (1, 0)),
                        jnp.transpose(enc[:, 2 * H + 2:2 * H + 3], (1, 0))], axis=0)  # [2,1,N]

    e = a_dst + a_srcT                                                       # [2, N, N]
    e = jnp.where(e > 0, e, LEAKY_SLOPE * e)                                 # leaky relu (f32)
    cnt = adj_ref[0:1].astype(f32)                                           # [1, N, N] counts
    # count-weighted softmax over sources (cnt=0 masks, cnt=k handles duplicate edges)
    p = cnt * jnp.exp(e - jnp.max(e, axis=-1, keepdims=True))
    att = (p * pl.reciprocal(jnp.sum(p, axis=-1, keepdims=True), approx=True)).astype(bf16)

    # Per-head aggregation on the MXU in bf16 (0.5 averaging already folded into x0/x1).
    h = (jnp.dot(att[0], enc[:, :H].astype(bf16), preferred_element_type=f32)
         + jnp.dot(att[1], enc[:, H:2 * H].astype(bf16), preferred_element_type=f32)
         + pv[0:1, :H])                                                      # [N, H] + bias
    h = jnp.maximum(h, 0.0)                                                  # relu
    h = h * pv[1:2, :H] + pv[2:3, :H]                                        # BN1 folded (eval)
    # dropout1: identity (eval mode)

    # ---------- GCNConv(H -> L) ----------------------------------------------------------
    xg = jnp.dot(h.astype(bf16), w_gcn_ref[...], preferred_element_type=f32)        # [N, L]
    h2 = jnp.dot(adj_ref[1], xg.astype(bf16), preferred_element_type=f32) + pv[3:4, :L]
    h2 = jnp.maximum(h2, 0.0)                                                # relu
    h2 = h2 * pv[4:5, :L] + pv[5:6, :L]                                      # BN2 folded (eval)
    # dropout2: identity (eval mode)

    # ---------- mu | logvar (single wide matmul) + reparameterize ------------------------
    mulv = (jnp.dot(h2.astype(bf16), w_mulv_ref[...], preferred_element_type=f32)
            + pv[6:7, :mpad])
    mulv_ref[...] = mulv                                                     # [N, mpad] lane-dense
    mu, lv = mulv[:, :L], mulv[:, L:2 * L]
    z = mu + eps_ref[...] * jnp.exp(0.5 * lv)                                # [N, L] (f32)

    # ---------- decode: gather z per edge, then expand with [D, L] weights ---------------
    # sel = [row_onehot | col_onehot] with edges on the LANE axis -> one gather matmul.
    zT = jnp.transpose(z, (1, 0)).astype(bf16)                               # [L, N]
    g = jnp.dot(zT, sel_ref[...], preferred_element_type=f32)                # [L, 2*E_pad]
    wdec = w_dec1_ref[...]                                                   # [D, 2L] bf16
    hdT = (jnp.dot(wdec[:, :L], g[:, :e_pad].astype(bf16), preferred_element_type=f32)
           + jnp.dot(wdec[:, L:], g[:, e_pad:].astype(bf16), preferred_element_type=f32)
           + bcol_ref[...])                                                  # [D, E_pad] + bias col
    hdT = jnp.maximum(hdT, 0.0)                                              # relu; dropout = id
    recon_ref[...] = (jnp.dot(w_d2_ref[...], hdT.astype(bf16), preferred_element_type=f32)
                      + pv[7:8, 0:1])                                        # [1, E_pad] lane-dense


# --------------------------------------------------------------------------------------
# Raw ("PyTorch-like") parameters
# --------------------------------------------------------------------------------------
def init_params(key, input_dim, hidden, latent, dec_channels):
    ks = jax.random.split(key, 16)

    def w(k, shape, scale=0.1):
        return (scale * jax.random.normal(k, shape)).astype(jnp.float32)

    return dict(
        wgat0=w(ks[0], (input_dim, hidden)),
        wgat1=w(ks[1], (input_dim, hidden)),
        asrc0=w(ks[2], (1, hidden)),
        adst0=w(ks[3], (1, hidden)),
        asrc1=w(ks[4], (1, hidden)),
        adst1=w(ks[5], (1, hidden)),
        bgat=jnp.zeros((1, hidden), jnp.float32),
        g1=jnp.ones((1, hidden), jnp.float32),
        beta1=jnp.zeros((1, hidden), jnp.float32),
        rm1=jnp.zeros((1, hidden), jnp.float32),
        rv1=jnp.ones((1, hidden), jnp.float32),
        wgcn=w(ks[6], (hidden, latent)),
        bgcn=jnp.zeros((1, latent), jnp.float32),
        g2=jnp.ones((1, latent), jnp.float32),
        beta2=jnp.zeros((1, latent), jnp.float32),
        rm2=jnp.zeros((1, latent), jnp.float32),
        rv2=jnp.ones((1, latent), jnp.float32),
        wmu=w(ks[7], (latent, latent)),
        bmu=w(ks[8], (1, latent)),
        wlv=w(ks[9], (latent, latent)),
        blv=w(ks[10], (1, latent)),
        wres=w(ks[11], (latent, latent)),
        bres=w(ks[12], (1, latent)),
        wd1a=w(ks[13], (latent, dec_channels)),
        wd1b=w(ks[14], (latent, dec_channels)),
        bd1=jnp.zeros((1, dec_channels), jnp.float32),
        wd2=w(ks[15], (dec_channels, 1)),
        bd2=jnp.zeros((1, 1), jnp.float32),
    )


# --------------------------------------------------------------------------------------
# Per-graph preprocessing (build once per graph and reuse across forward calls)
# --------------------------------------------------------------------------------------
def build_graph_operands(edge_index, num_nodes, e_pad):
    N = num_nodes
    E = edge_index.shape[1]
    row_idx, col_idx = edge_index[0], edge_index[1]                # source, target

    eye = jnp.eye(N, dtype=jnp.float32)
    A = jnp.zeros((N, N), jnp.float32).at[col_idx, row_idx].add(1.0)   # A[i,j] = #edges j->i
    gat_cnt = A * (1.0 - eye) + eye                                # GAT: remove+re-add self loops
    A_gcn = A + eye                                                # GCN: add self loops
    dinv = jax.lax.rsqrt(jnp.sum(A_gcn, axis=1))
    gcn_adj = dinv[:, None] * A_gcn * dinv[None, :]                # D^-1/2 (A+I) D^-1/2
    adj = jnp.stack([gat_cnt, gcn_adj], axis=0).astype(jnp.bfloat16)   # [2, N, N] bf16

    er = jnp.arange(E)
    sel = (jnp.zeros((N, 2 * e_pad), jnp.float32)
           .at[row_idx, er].set(1.0)                               # row one-hot, lanes [0, E)
           .at[col_idx, e_pad + er].set(1.0)                       # col one-hot, lanes [E_pad, ..)
           ).astype(jnp.bfloat16)                                  # [N, 2*E_pad] bf16 (exact 0/1)
    return adj, sel


# --------------------------------------------------------------------------------------
# Host-side folding of the many small parameters into a few wide bf16 operands
# --------------------------------------------------------------------------------------
def fold_params(p, *, hidden, latent, dec, ppad, mpad):
    f32, bf16 = jnp.float32, jnp.bfloat16

    # Fused encoder matmul (0.5 head-averaging folded into the feature columns only;
    # attention-vector columns stay unscaled so logits match PyTorch GATConv).
    w_enc = jnp.concatenate(
        [0.5 * p["wgat0"], 0.5 * p["wgat1"],
         p["wgat0"] @ p["asrc0"].T, p["wgat0"] @ p["adst0"].T,
         p["wgat1"] @ p["asrc1"].T, p["wgat1"] @ p["adst1"].T], axis=1)

    # BatchNorm (eval) folded to scale/shift
    bn1_scale = p["g1"] * jax.lax.rsqrt(p["rv1"] + BN_EPS)
    bn1_shift = p["beta1"] - p["rm1"] * bn1_scale
    bn2_scale = p["g2"] * jax.lax.rsqrt(p["rv2"] + BN_EPS)
    bn2_shift = p["beta2"] - p["rm2"] * bn2_scale

    # mu | logvar fused into one lane-padded matmul
    w_mulv = (jnp.zeros((latent, mpad), f32)
              .at[:, :latent].set(p["wmu"])
              .at[:, latent:2 * latent].set(p["wlv"]))
    b_mulv = (jnp.zeros((mpad,), f32)
              .at[:latent].set(p["bmu"][0])
              .at[latent:2 * latent].set(p["blv"][0]))

    # residual Linear composed with the decoder's first Linear (no nonlinearity between):
    #   hd[e] = z[row[e]] @ (wres@wd1a) + z[col[e]] @ (wres@wd1b) + (bres@(wd1a+wd1b) + bd1)
    wu = p["wres"] @ p["wd1a"]                                     # [L, D]
    wv = p["wres"] @ p["wd1b"]                                     # [L, D]
    w_dec1 = jnp.concatenate([wu.T, wv.T], axis=1)                 # [D, 2L]
    b_hd = p["bres"] @ p["wd1a"] + p["bres"] @ p["wd1b"] + p["bd1"]    # [1, D]
    bcol = b_hd.T.astype(f32)                                      # [D, 1] column bias

    w_d2 = p["wd2"].T                                              # [1, D]

    def row(v):
        v = jnp.ravel(v).astype(f32)
        return jnp.zeros((ppad,), f32).at[:v.shape[0]].set(v)

    pvec = jnp.stack([
        row(p["bgat"]), row(bn1_scale), row(bn1_shift),
        row(p["bgcn"]), row(bn2_scale), row(bn2_shift),
        row(b_mulv), row(p["bd2"]),
    ], axis=0)                                                     # [8, ppad] f32

    return (w_enc.astype(bf16), p["wgcn"].astype(bf16), w_mulv.astype(bf16),
            w_dec1.astype(bf16), w_d2.astype(bf16), pvec, bcol)


# --------------------------------------------------------------------------------------
# Wrapper
# --------------------------------------------------------------------------------------
def gnn_vae_forward(x, edge_index, params, eps, *, graph=None, folded=None):
    """Returns (recon [E], mu [N,L], logvar [N,L]).

    `graph` (from build_graph_operands) and `folded` (from fold_params) may be passed
    in to keep the O(N^2)/O(N*E) preprocessing out of the per-call path.
    """
    N = x.shape[0]
    E = edge_index.shape[1]
    F_in = x.shape[1]
    hidden = params["wgat0"].shape[1]
    latent = params["wmu"].shape[0]
    dec = params["wd1a"].shape[1]
    e_pad = _round_up(max(E, 1), LANE)
    mpad = _round_up(2 * latent, LANE)                             # mu|logvar pad (own width)
    ppad = max(_round_up(hidden, LANE), mpad)                      # packed-param row width

    if graph is None:
        graph = build_graph_operands(edge_index, N, e_pad)
    adj, sel = graph
    if folded is None:
        folded = fold_params(params, hidden=hidden, latent=latent, dec=dec,
                             ppad=ppad, mpad=mpad)
    w_enc, w_gcn, w_mulv, w_dec1, w_d2, pvec, bcol = folded

    x_bf = x.astype(jnp.bfloat16)
    inputs = (x_bf, adj, eps, sel, w_enc, w_gcn, w_mulv, w_dec1, w_d2, pvec, bcol)

    # Footprint-sized VMEM limit + cost estimate for the XLA scheduler.
    in_bytes = sum(int(a.size) * a.dtype.itemsize for a in inputs)
    out_bytes = (1 * e_pad + N * mpad) * 4
    flops = 2 * (N * F_in * (2 * hidden + 4)        # fused encoder matmul
                 + 2 * N * N * hidden               # two attention aggregations
                 + N * hidden * latent              # GCN feature matmul
                 + N * N * latent                   # GCN aggregation
                 + N * latent * mpad                # mu|logvar
                 + latent * N * 2 * e_pad           # edge gather
                 + 2 * dec * latent * e_pad         # decoder expansion
                 + dec * e_pad)                     # final 1-lane matmul
    transcendentals = 2 * N * N + N * latent + 2 * N
    vmem_limit = int(min(56 * 2**20, max(16 * 2**20, 8 * (in_bytes + out_bytes))))

    vmem = pl.BlockSpec(memory_space=pltpu.MemorySpace.VMEM)
    kernel = functools.partial(gnn_vae_kernel, hidden=hidden, latent=latent, dec=dec,
                               e_pad=e_pad, mpad=mpad)

    recon_row, mulv = pl.pallas_call(
        kernel,
        out_shape=(
            jax.ShapeDtypeStruct((1, e_pad), jnp.float32),         # recon, edges on lanes
            jax.ShapeDtypeStruct((N, mpad), jnp.float32),          # stacked mu | logvar
        ),
        in_specs=[vmem] * len(inputs),
        out_specs=(vmem, vmem),
        compiler_params=pltpu.CompilerParams(vmem_limit_bytes=vmem_limit),
        cost_estimate=pl.CostEstimate(flops=flops, transcendentals=transcendentals,
                                      bytes_accessed=in_bytes + out_bytes),
    )(*inputs)

    recon = recon_row[0, :E]                                       # .squeeze() as in PyTorch
    mu = mulv[:, :latent]
    logvar = mulv[:, latent:2 * latent]
    return recon, mu, logvar


if __name__ == "__main__":
    key = jax.random.PRNGKey(0)
    N, E = 16, 24
    input_dim, hidden, latent, dec_channels = 8, 16, 16, 32

    kx, ke, kp, keps = jax.random.split(key, 4)
    x = jax.random.normal(kx, (N, input_dim), dtype=jnp.float32)
    edge_index = jax.random.randint(ke, (2, E), 0, N)
    params = init_params(kp, input_dim, hidden, latent, dec_channels)
    eps = jax.random.normal(keps, (N, latent), dtype=jnp.float32)  # reparameterize noise

    # Graph operands / folded weights built once and reused (out of the per-call path).
    e_pad = _round_up(E, LANE)
    mpad = _round_up(2 * latent, LANE)
    ppad = max(_round_up(hidden, LANE), mpad)
    graph = build_graph_operands(edge_index, N, e_pad)
    folded = fold_params(params, hidden=hidden, latent=latent, dec=dec_channels,
                         ppad=ppad, mpad=mpad)

    recon, mu, logvar = gnn_vae_forward(x, edge_index, params, eps, graph=graph, folded=folded)
    jax.block_until_ready((recon, mu, logvar))
    assert recon.shape == (E,) and mu.shape == (N, latent) and logvar.shape == (N, latent)
    print("KERNEL_OK")
</pallas_src>

<mosaic_0001>
module attributes {stable_mosaic.version = 11 : i64} {
  func.func @gnn_vae_kernel(%arg0: memref<16x8xbf16, #tpu.memory_space<vmem>>, %arg1: memref<2x16x16xbf16, #tpu.memory_space<vmem>>, %arg2: memref<16x16xf32, #tpu.memory_space<vmem>>, %arg3: memref<16x256xbf16, #tpu.memory_space<vmem>>, %arg4: memref<8x36xbf16, #tpu.memory_space<vmem>>, %arg5: memref<16x16xbf16, #tpu.memory_space<vmem>>, %arg6: memref<16x128xbf16, #tpu.memory_space<vmem>>, %arg7: memref<32x32xbf16, #tpu.memory_space<vmem>>, %arg8: memref<1x32xbf16, #tpu.memory_space<vmem>>, %arg9: memref<8x128xf32, #tpu.memory_space<vmem>>, %arg10: memref<32x1xf32, #tpu.memory_space<vmem>>, %arg11: memref<1x128xf32, #tpu.memory_space<vmem>>, %arg12: memref<16x128xf32, #tpu.memory_space<vmem>>) attributes {dimension_semantics = [], scalar_prefetch = 0 : i64, scratch_operands = 0 : i64, tpu.core_type = #tpu.core_type<tc>} {
    %c0 = arith.constant 0 : index
    %c0_0 = arith.constant 0 : index
    %0 = vector.load %arg9[%c0, %c0_0] : memref<8x128xf32, #tpu.memory_space<vmem>>, vector<8x128xf32>
    %c0_1 = arith.constant 0 : index
    %c0_2 = arith.constant 0 : index
    %1 = vector.load %arg0[%c0_1, %c0_2] : memref<16x8xbf16, #tpu.memory_space<vmem>>, vector<16x8xbf16>
    %c0_3 = arith.constant 0 : index
    %c0_4 = arith.constant 0 : index
    %2 = vector.load %arg4[%c0_3, %c0_4] : memref<8x36xbf16, #tpu.memory_space<vmem>>, vector<8x36xbf16>
    %cst = arith.constant dense<0.000000e+00> : vector<16x36xf32>
    %3 = tpu.matmul %1, %2, %cst {dimension_numbers = #tpu.dot_dimension_numbers<[1], [0], [0], [1], [0, 0, 1, 1], [], []>} : vector<16x8xbf16>, vector<8x36xbf16>, vector<16x36xf32> -> vector<16x36xf32>
    %4 = vector.extract_strided_slice %3 {offsets = [0, 33], sizes = [16, 1], strides = [1, 1]} : vector<16x36xf32> to vector<16x1xf32>
    %5 = vector.extract_strided_slice %3 {offsets = [0, 35], sizes = [16, 1], strides = [1, 1]} : vector<16x36xf32> to vector<16x1xf32>
    %6 = vector.shape_cast %4 : vector<16x1xf32> to vector<1x16x1xf32>
    %7 = vector.shape_cast %5 : vector<16x1xf32> to vector<1x16x1xf32>
    %8 = tpu.concatenate %6, %7 in 0 : vector<1x16x1xf32>, vector<1x16x1xf32> -> vector<2x16x1xf32>
    %9 = vector.extract_strided_slice %3 {offsets = [0, 32], sizes = [16, 1], strides = [1, 1]} : vector<16x36xf32> to vector<16x1xf32>
    %10 = tpu.transpose %9, [1, 0] : vector<16x1xf32> -> vector<1x16xf32>
    %11 = vector.extract_strided_slice %3 {offsets = [0, 34], sizes = [16, 1], strides = [1, 1]} : vector<16x36xf32> to vector<16x1xf32>
    %12 = tpu.transpose %11, [1, 0] : vector<16x1xf32> -> vector<1x16xf32>
    %13 = vector.shape_cast %10 : vector<1x16xf32> to vector<1x1x16xf32>
    %14 = vector.shape_cast %12 : vector<1x16xf32> to vector<1x1x16xf32>
    %15 = tpu.concatenate %13, %14 in 0 : vector<1x1x16xf32>, vector<1x1x16xf32> -> vector<2x1x16xf32>
    %16 = vector.broadcast %8 : vector<2x16x1xf32> to vector<2x16x16xf32>
    %17 = vector.broadcast %15 : vector<2x1x16xf32> to vector<2x16x16xf32>
    %18 = arith.addf %16, %17 : vector<2x16x16xf32>
    %cst_5 = arith.constant 0.000000e+00 : f32
    %19 = vector.broadcast %cst_5 : f32 to vector<2x16x16xf32>
    %20 = arith.cmpf ogt, %18, %19 : vector<2x16x16xf32>
    %cst_6 = arith.constant 2.000000e-01 : f32
    %21 = vector.broadcast %cst_6 : f32 to vector<2x16x16xf32>
    %22 = arith.mulf %21, %18 : vector<2x16x16xf32>
    %23 = arith.select %20, %18, %22 : vector<2x16x16xi1>, vector<2x16x16xf32>
    %c0_7 = arith.constant 0 : index
    %c0_8 = arith.constant 0 : index
    %c0_9 = arith.constant 0 : index
    %24 = vector.load %arg1[%c0_7, %c0_8, %c0_9] : memref<2x16x16xbf16, #tpu.memory_space<vmem>>, vector<1x16x16xbf16>
    %25 = arith.extf %24 : vector<1x16x16xbf16> to vector<1x16x16xf32>
    %cst_10 = arith.constant dense<0xFF800000> : vector<2x16xf32>
    %26 = vector.multi_reduction <maximumf>, %23, %cst_10 [2] : vector<2x16x16xf32> to vector<2x16xf32>
    %27 = vector.shape_cast %26 : vector<2x16xf32> to vector<2x16x1xf32>
    %28 = vector.broadcast %27 : vector<2x16x1xf32> to vector<2x16x16xf32>
    %29 = arith.subf %23, %28 : vector<2x16x16xf32>
    %30 = math.exp %29 : vector<2x16x16xf32>
    %31 = vector.broadcast %25 : vector<1x16x16xf32> to vector<2x16x16xf32>
    %32 = arith.mulf %31, %30 : vector<2x16x16xf32>
    %cst_11 = arith.constant dense<0.000000e+00> : vector<2x16xf32>
    %33 = vector.multi_reduction <add>, %32, %cst_11 [2] : vector<2x16x16xf32> to vector<2x16xf32>
    %34 = vector.shape_cast %33 : vector<2x16xf32> to vector<2x16x1xf32>
    %35 = tpu.reciprocal %34 {approx = true} : vector<2x16x1xf32> -> vector<2x16x1xf32>
    %36 = vector.broadcast %35 : vector<2x16x1xf32> to vector<2x16x16xf32>
    %37 = arith.mulf %32, %36 : vector<2x16x16xf32>
    %38 = arith.truncf %37 : vector<2x16x16xf32> to vector<2x16x16xbf16>
    %39 = vector.extract_strided_slice %38 {offsets = [0, 0, 0], sizes = [1, 16, 16], strides = [1, 1, 1]} : vector<2x16x16xbf16> to vector<1x16x16xbf16>
    %40 = vector.shape_cast %39 : vector<1x16x16xbf16> to vector<16x16xbf16>
    %41 = vector.extract_strided_slice %3 {offsets = [0, 0], sizes = [16, 16], strides = [1, 1]} : vector<16x36xf32> to vector<16x16xf32>
    %42 = arith.truncf %41 : vector<16x16xf32> to vector<16x16xbf16>
    %cst_12 = arith.constant dense<0.000000e+00> : vector<16x16xf32>
    %43 = tpu.matmul %40, %42, %cst_12 {dimension_numbers = #tpu.dot_dimension_numbers<[1], [0], [0], [1], [0, 0, 1, 1], [], []>} : vector<16x16xbf16>, vector<16x16xbf16>, vector<16x16xf32> -> vector<16x16xf32>
    %44 = vector.extract_strided_slice %38 {offsets = [1, 0, 0], sizes = [1, 16, 16], strides = [1, 1, 1]} : vector<2x16x16xbf16> to vector<1x16x16xbf16>
    %45 = vector.shape_cast %44 : vector<1x16x16xbf16> to vector<16x16xbf16>
    %46 = vector.extract_strided_slice %3 {offsets = [0, 16], sizes = [16, 16], strides = [1, 1]} : vector<16x36xf32> to vector<16x16xf32>
    %47 = arith.truncf %46 : vector<16x16xf32> to vector<16x16xbf16>
    %cst_13 = arith.constant dense<0.000000e+00> : vector<16x16xf32>
    %48 = tpu.matmul %45, %47, %cst_13 {dimension_numbers = #tpu.dot_dimension_numbers<[1], [0], [0], [1], [0, 0, 1, 1], [], []>} : vector<16x16xbf16>, vector<16x16xbf16>, vector<16x16xf32> -> vector<16x16xf32>
    %49 = arith.addf %43, %48 : vector<16x16xf32>
    %50 = vector.extract_strided_slice %0 {offsets = [0, 0], sizes = [1, 16], strides = [1, 1]} : vector<8x128xf32> to vector<1x16xf32>
    %51 = vector.broadcast %50 : vector<1x16xf32> to vector<16x16xf32>
    %52 = arith.addf %49, %51 : vector<16x16xf32>
    %cst_14 = arith.constant 0.000000e+00 : f32
    %53 = vector.broadcast %cst_14 : f32 to vector<16x16xf32>
    %54 = arith.maximumf %52, %53 : vector<16x16xf32>
    %55 = vector.extract_strided_slice %0 {offsets = [1, 0], sizes = [1, 16], strides = [1, 1]} : vector<8x128xf32> to vector<1x16xf32>
    %56 = vector.broadcast %55 : vector<1x16xf32> to vector<16x16xf32>
    %57 = arith.mulf %54, %56 : vector<16x16xf32>
    %58 = vector.extract_strided_slice %0 {offsets = [2, 0], sizes = [1, 16], strides = [1, 1]} : vector<8x128xf32> to vector<1x16xf32>
    %59 = vector.broadcast %58 : vector<1x16xf32> to vector<16x16xf32>
    %60 = arith.addf %57, %59 : vector<16x16xf32>
    %61 = arith.truncf %60 : vector<16x16xf32> to vector<16x16xbf16>
    %c0_15 = arith.constant 0 : index
    %c0_16 = arith.constant 0 : index
    %62 = vector.load %arg5[%c0_15, %c0_16] : memref<16x16xbf16, #tpu.memory_space<vmem>>, vector<16x16xbf16>
    %cst_17 = arith.constant dense<0.000000e+00> : vector<16x16xf32>
    %63 = tpu.matmul %61, %62, %cst_17 {dimension_numbers = #tpu.dot_dimension_numbers<[1], [0], [0], [1], [0, 0, 1, 1], [], []>} : vector<16x16xbf16>, vector<16x16xbf16>, vector<16x16xf32> -> vector<16x16xf32>
    %c1 = arith.constant 1 : index
    %c0_18 = arith.constant 0 : index
    %c0_19 = arith.constant 0 : index
    %64 = vector.load %arg1[%c1, %c0_18, %c0_19] : memref<2x16x16xbf16, #tpu.memory_space<vmem>>, vector<1x16x16xbf16>
    %65 = vector.shape_cast %64 : vector<1x16x16xbf16> to vector<16x16xbf16>
    %66 = arith.truncf %63 : vector<16x16xf32> to vector<16x16xbf16>
    %cst_20 = arith.constant dense<0.000000e+00> : vector<16x16xf32>
    %67 = tpu.matmul %65, %66, %cst_20 {dimension_numbers = #tpu.dot_dimension_numbers<[1], [0], [0], [1], [0, 0, 1, 1], [], []>} : vector<16x16xbf16>, vector<16x16xbf16>, vector<16x16xf32> -> vector<16x16xf32>
    %68 = vector.extract_strided_slice %0 {offsets = [3, 0], sizes = [1, 16], strides = [1, 1]} : vector<8x128xf32> to vector<1x16xf32>
    %69 = vector.broadcast %68 : vector<1x16xf32> to vector<16x16xf32>
    %70 = arith.addf %67, %69 : vector<16x16xf32>
    %cst_21 = arith.constant 0.000000e+00 : f32
    %71 = vector.broadcast %cst_21 : f32 to vector<16x16xf32>
    %72 = arith.maximumf %70, %71 : vector<16x16xf32>
    %73 = vector.extract_strided_slice %0 {offsets = [4, 0], sizes = [1, 16], strides = [1, 1]} : vector<8x128xf32> to vector<1x16xf32>
    %74 = vector.broadcast %73 : vector<1x16xf32> to vector<16x16xf32>
    %75 = arith.mulf %72, %74 : vector<16x16xf32>
    %76 = vector.extract_strided_slice %0 {offsets = [5, 0], sizes = [1, 16], strides = [1, 1]} : vector<8x128xf32> to vector<1x16xf32>
    %77 = vector.broadcast %76 : vector<1x16xf32> to vector<16x16xf32>
    %78 = arith.addf %75, %77 : vector<16x16xf32>
    %79 = arith.truncf %78 : vector<16x16xf32> to vector<16x16xbf16>
    %c0_22 = arith.constant 0 : index
    %c0_23 = arith.constant 0 : index
    %80 = vector.load %arg6[%c0_22, %c0_23] : memref<16x128xbf16, #tpu.memory_space<vmem>>, vector<16x128xbf16>
    %cst_24 = arith.constant dense<0.000000e+00> : vector<16x128xf32>
    %81 = tpu.matmul %79, %80, %cst_24 {dimension_numbers = #tpu.dot_dimension_numbers<[1], [0], [0], [1], [0, 0, 1, 1], [], []>} : vector<16x16xbf16>, vector<16x128xbf16>, vector<16x128xf32> -> vector<16x128xf32>
    %82 = vector.extract_strided_slice %0 {offsets = [6, 0], sizes = [1, 128], strides = [1, 1]} : vector<8x128xf32> to vector<1x128xf32>
    %83 = vector.broadcast %82 : vector<1x128xf32> to vector<16x128xf32>
    %84 = arith.addf %81, %83 : vector<16x128xf32>
    %c0_25 = arith.constant 0 : index
    %c0_26 = arith.constant 0 : index
    %85 = vector.load %arg12[%c0_25, %c0_26] : memref<16x128xf32, #tpu.memory_space<vmem>>, vector<16x128xf32>
    tpu.vector_store %arg12[%c0_25, %c0_26], %84 {strides = array<i32>} : memref<16x128xf32, #tpu.memory_space<vmem>>, vector<16x128xf32>,
    %86 = vector.extract_strided_slice %84 {offsets = [0, 0], sizes = [16, 16], strides = [1, 1]} : vector<16x128xf32> to vector<16x16xf32>
    %87 = vector.extract_strided_slice %84 {offsets = [0, 16], sizes = [16, 16], strides = [1, 1]} : vector<16x128xf32> to vector<16x16xf32>
    %c0_27 = arith.constant 0 : index
    %c0_28 = arith.constant 0 : index
    %88 = vector.load %arg2[%c0_27, %c0_28] : memref<16x16xf32, #tpu.memory_space<vmem>>, vector<16x16xf32>
    %cst_29 = arith.constant 5.000000e-01 : f32
    %89 = vector.broadcast %cst_29 : f32 to vector<16x16xf32>
    %90 = arith.mulf %89, %87 : vector<16x16xf32>
    %91 = math.exp %90 : vector<16x16xf32>
    %92 = arith.mulf %88, %91 : vector<16x16xf32>
    %93 = arith.addf %86, %92 : vector<16x16xf32>
    %94 = tpu.transpose %93, [1, 0] : vector<16x16xf32> -> vector<16x16xf32>
    %95 = arith.truncf %94 : vector<16x16xf32> to vector<16x16xbf16>
    %c0_30 = arith.constant 0 : index
    %c0_31 = arith.constant 0 : index
    %96 = vector.load %arg3[%c0_30, %c0_31] : memref<16x256xbf16, #tpu.memory_space<vmem>>, vector<16x256xbf16>
    %cst_32 = arith.constant dense<0.000000e+00> : vector<16x256xf32>
    %97 = tpu.matmul %95, %96, %cst_32 {dimension_numbers = #tpu.dot_dimension_numbers<[1], [0], [0], [1], [0, 0, 1, 1], [], []>} : vector<16x16xbf16>, vector<16x256xbf16>, vector<16x256xf32> -> vector<16x256xf32>
    %c0_33 = arith.constant 0 : index
    %c0_34 = arith.constant 0 : index
    %98 = vector.load %arg7[%c0_33, %c0_34] : memref<32x32xbf16, #tpu.memory_space<vmem>>, vector<32x32xbf16>
    %99 = vector.extract_strided_slice %98 {offsets = [0, 0], sizes = [32, 16], strides = [1, 1]} : vector<32x32xbf16> to vector<32x16xbf16>
    %100 = vector.extract_strided_slice %97 {offsets = [0, 0], sizes = [16, 128], strides = [1, 1]} : vector<16x256xf32> to vector<16x128xf32>
    %101 = arith.truncf %100 : vector<16x128xf32> to vector<16x128xbf16>
    %cst_35 = arith.constant dense<0.000000e+00> : vector<32x128xf32>
    %102 = tpu.matmul %99, %101, %cst_35 {dimension_numbers = #tpu.dot_dimension_numbers<[1], [0], [0], [1], [0, 0, 1, 1], [], []>} : vector<32x16xbf16>, vector<16x128xbf16>, vector<32x128xf32> -> vector<32x128xf32>
    %103 = vector.extract_strided_slice %98 {offsets = [0, 16], sizes = [32, 16], strides = [1, 1]} : vector<32x32xbf16> to vector<32x16xbf16>
    %104 = vector.extract_strided_slice %97 {offsets = [0, 128], sizes = [16, 128], strides = [1, 1]} : vector<16x256xf32> to vector<16x128xf32>
    %105 = arith.truncf %104 : vector<16x128xf32> to vector<16x128xbf16>
    %cst_36 = arith.constant dense<0.000000e+00> : vector<32x128xf32>
    %106 = tpu.matmul %103, %105, %cst_36 {dimension_numbers = #tpu.dot_dimension_numbers<[1], [0], [0], [1], [0, 0, 1, 1], [], []>} : vector<32x16xbf16>, vector<16x128xbf16>, vector<32x128xf32> -> vector<32x128xf32>
    %107 = arith.addf %102, %106 : vector<32x128xf32>
    %c0_37 = arith.constant 0 : index
    %c0_38 = arith.constant 0 : index
    %108 = vector.load %arg10[%c0_37, %c0_38] : memref<32x1xf32, #tpu.memory_space<vmem>>, vector<32x1xf32>
    %109 = vector.broadcast %108 : vector<32x1xf32> to vector<32x128xf32>
    %110 = arith.addf %107, %109 : vector<32x128xf32>
    %cst_39 = arith.constant 0.000000e+00 : f32
    %111 = vector.broadcast %cst_39 : f32 to vector<32x128xf32>
    %112 = arith.maximumf %110, %111 : vector<32x128xf32>
    %c0_40 = arith.constant 0 : index
    %c0_41 = arith.constant 0 : index
    %113 = vector.load %arg8[%c0_40, %c0_41] : memref<1x32xbf16, #tpu.memory_space<vmem>>, vector<1x32xbf16>
    %114 = arith.truncf %112 : vector<32x128xf32> to vector<32x128xbf16>
    %cst_42 = arith.constant dense<0.000000e+00> : vector<1x128xf32>
    %115 = tpu.matmul %113, %114, %cst_42 {dimension_numbers = #tpu.dot_dimension_numbers<[1], [0], [0], [1], [0, 0, 1, 1], [], []>} : vector<1x32xbf16>, vector<32x128xbf16>, vector<1x128xf32> -> vector<1x128xf32>
    %116 = vector.extract_strided_slice %0 {offsets = [7, 0], sizes = [1, 1], strides = [1, 1]} : vector<8x128xf32> to vector<1x1xf32>
    %117 = vector.broadcast %116 : vector<1x1xf32> to vector<1x128xf32>
    %118 = arith.addf %115, %117 : vector<1x128xf32>
    %c0_43 = arith.constant 0 : index
    %c0_44 = arith.constant 0 : index
    %119 = vector.load %arg11[%c0_43, %c0_44] : memref<1x128xf32, #tpu.memory_space<vmem>>, vector<1x128xf32>
    tpu.vector_store %arg11[%c0_43, %c0_44], %118 {strides = array<i32>} : memref<1x128xf32, #tpu.memory_space<vmem>>, vector<1x128xf32>,
    return
  }
}

</mosaic_0001>

<bundles_post_ra>
// kernel: tpu_custom_call.1
= control target key start
LH: loop header
LB: loop body
LE: loop exit
PB: predicated region body
PF: predicated region fallthrough
CT: control target
= control target key end

     0   :  { %18 = vsyncpa [#allocation3], 0  ;;  %s1493_s0 = inlined_call_operand.vmem [shape: bf16[16,8], index: 0, kind: input, shape index: {}]   ;;  %s1494_s1 = inlined_call_operand.vmem [shape: bf16[2,16,16], index: 1, kind: input, shape index: {}]   ;;  %s1495_s2 = inlined_call_operand.vmem [shape: f32[16,16], index: 2, kind: input, shape index: {}]   ;;  %s1496_s3 = inlined_call_operand.vmem [shape: bf16[16,256], index: 3, kind: input, shape index: {}]   ;;  %s1497_s4 = inlined_call_operand.hbm [shape: bf16[8,36], index: 4, kind: input, shape index: {}]   ;;  %s1498_s5 = inlined_call_operand.hbm [shape: bf16[16,16], index: 5, kind: input, shape index: {}]   ;;  %s1499_s6 = inlined_call_operand.hbm [shape: bf16[16,128], index: 6, kind: input, shape index: {}]   ;;  %s1500_s7 = inlined_call_operand.hbm [shape: bf16[32,32], index: 7, kind: input, shape index: {}]   ;;  %s1501_s8 = inlined_call_operand.vmem [shape: bf16[1,32], index: 8, kind: input, shape index: {}]   ;;  %s1502_s9 = inlined_call_operand.vmem [shape: f32[8,128], index: 9, kind: input, shape index: {}]   ;;  %s1503_s10 = inlined_call_operand.vmem [shape: f32[32,1], index: 10, kind: input, shape index: {}]   ;;  %s1504_s11 = inlined_call_operand.hbm [shape: f32[1,128], index: 11, kind: output, shape index: {0}]   ;;  %s1505_s12 = inlined_call_operand.hbm [shape: f32[16,128], index: 12, kind: output, shape index: {1}]  }
   0x1   :  { %19 = vsyncpa [#allocation6], 0 }
   0x2   :  { %20 = vsyncpa [#allocation9], 0 }
   0x3   :  { %21 = vsyncpa [#allocation4], 0 }
   0x4   :  { %22 = vsyncpa [#allocation12], 0  ;;  %s1271_s21 = smov [#allocation5]  }
   0x5   :  { %s46_s22 = sshll.u32 %s1271_s21, 4  ;;  %s47_s22 = int_to_ptr.vmem [resolvable:$true] %s46_s22 }
   0x6   :  { %s1149_s23 = scalar_lea.vmem %s47_s22, 128  ;;  %p1154_p1 = scmp.lt.s32.totalorder %s47_s22, %s47_s22 }
   0x7   :  { %p1150_p0 = scmp.ne.s32.totalorder %s47_s22, %s1149_s23  ;;  %p1155_p2 = scmp.lt.s32.totalorder %s1149_s23, %s1149_s23 }
   0x9   :  { %p1156_p3 = por %p1155_p2, %p1154_p1 }
   0xb   :  { %p1157_p4 = pnand %p1156_p3, %p1150_p0 }
   0xd   :  { %1160 = shalt.err (!%p1157_p4)
}
   0xe   :  { %s1272_s24 = smov 64   ;;  %s1273_s25 = smov 4  }
   0xf   :  { %52 = dma.hbm_to_vmem [thread:$0]  %s1498_s5, 128, %s47_s22, [#allocation6], %s1272_s24, %s1272_s24, %s1273_s25  }
  0x10   :  { %s1274_s28 = smov [#allocation2]   ;;  %s1275_s30 = smov [#allocation7]  }
  0x11   :  { %s37_s29 = sshll.u32 %s1274_s28, 4  ;;  %s58_s13 = sshll.u32 %s1275_s30, 4  ;;  %s38_s29 = int_to_ptr.vmem [resolvable:$true] %s37_s29  ;;  %s59_s13 = int_to_ptr.vmem [resolvable:$true] %s58_s13 }
  0x12   :  { %s1169_s14 = scalar_lea.vmem %s38_s29, 64  ;;  %p1174_p6 = scmp.lt.s32.totalorder %s38_s29, %s38_s29 }
  0x13   :  { %p1170_p5 = scmp.ne.s32.totalorder %s38_s29, %s1169_s14  ;;  %p1175_p7 = scmp.lt.s32.totalorder %s1169_s14, %s1169_s14 }
  0x15   :  { %p1176_p8 = por %p1175_p7, %p1174_p6 }
  0x17   :  { %p1177_p9 = pnand %p1176_p8, %p1170_p5 }
  0x19   :  { %1180 = shalt.err (!%p1177_p9)
}
  0x1a   :  { %40 = dma.hbm_to_vmem [thread:$0]  %s1497_s4, 64, %s38_s29, [#allocation3]  }
  0x1b   :  { %s1189_s17 = scalar_lea.vmem %s59_s13, 128  ;;  %p1194_p11 = scmp.lt.s32.totalorder %s59_s13, %s59_s13 }
  0x1c   :  { %p1190_p10 = scmp.ne.s32.totalorder %s59_s13, %s1189_s17  ;;  %p1195_p12 = scmp.lt.s32.totalorder %s1189_s17, %s1189_s17 }
  0x1e   :  { %p1196_p13 = por %p1195_p12, %p1194_p11 }
  0x20   :  { %p1197_p0 = pnand %p1196_p13, %p1190_p10 }
  0x22   :  { %1200 = shalt.err (!%p1197_p0)
}
  0x23   :  { %64 = dma.hbm_to_vmem [thread:$0]  %s1499_s6, 128, %s59_s13, [#allocation6], %s1272_s24, %s1272_s24, %s1273_s25  }
  0x24   :  { %s1276_s19 = smov [#allocation8]  }
  0x25   :  { %s70_s20 = sshll.u32 %s1276_s19, 4  ;;  %s71_s20 = int_to_ptr.vmem [resolvable:$true] %s70_s20 }
  0x26   :  { %s1209_s21 = scalar_lea.vmem %s71_s20, 256  ;;  %p1214_p2 = scmp.lt.s32.totalorder %s71_s20, %s71_s20 }
  0x27   :  { %p1210_p1 = scmp.ne.s32.totalorder %s71_s20, %s1209_s21  ;;  %p1215_p3 = scmp.lt.s32.totalorder %s1209_s21, %s1209_s21 }
  0x29   :  { %p1216_p4 = por %p1215_p3, %p1214_p2 }
  0x2b   :  { %p1217_p5 = pnand %p1216_p4, %p1210_p1 }
  0x2d   :  { %1220 = shalt.err (!%p1217_p5)
}
  0x2e   :  { %76 = dma.hbm_to_vmem [thread:$0]  %s1500_s7, 256, %s71_s20, [#allocation9], %s1272_s24, %s1272_s24, %s1273_s25  }
  0x2f   :  { %1261 = dma.done.wait [#allocation3], 64  }
  0x30   :  { %1262 = vsyncadd [#allocation3], 4294967232 }
  0x31   :  { %1263 = dma.done.wait [#allocation6], 256  }
  0x32   :  { %1264 = vsyncadd [#allocation6], 4294967040 }
  0x33   :  { %1265 = dma.done.wait [#allocation9], 256  }
  0x34   :  { %1266 = vsyncadd [#allocation9], 4294967040  ;;  %v1277_v0 = vmov 0.0   ;;  %vm1278_vm0 = vmmov 0   ;;  %vm109_vm1 = vcmask 1043456   ;;  %vm105_vm2 = vcmask 64512  }
  0x35   :  { %1034 = vmatprep.subr.bf16.mxu0 %v1277_v0  ;;  %1036 = vmatprep.mubr.msk.bf16.mxu0 %vm1278_vm0, %v1277_v0  ;;  %v99_v1 = vld [vmem:[#allocation2] sm:$0xf]  ;;  %v1112_v3 = vld [vmem:[%s1493_s0] sm:$0xff]   ;;  %v1279_v4 = vmov 33   ;;  %s1280_s23 = smov 96   ;;  %s1281_s24 = smov 126   ;;  %v252_v16 = vlaneseq }
  0x36   :  { %1040 = vmatprep.subr.bf16.mxu1 %v1277_v0  ;;  %1042 = vmatprep.mubr.msk.bf16.mxu1 %vm1278_vm0, %v1277_v0  ;;  %v111_v2 = vsel %vm109_vm1, %v99_v1, 0  ;;  %s1282_s25 = smov 94   ;;  %vm280_vm7 = vcmask 130048   ;;  %v1010_v55 = vld [vmem:[%s1494_s1] sm:$0xff]   ;;  %s1283_s27 = smov 112   ;;  %vm909_vm8 = vcmask 261120  }
  0x37   :  { %1035 = vmatpush3.bf16.msra.mxu0 %v111_v2  ;;  %1109 = vset.pattern.permute.xlu1 %v1279_v4  ;;  %v1391_v18 = vshrl.u32 %v252_v16, 7  ;;  %v1012_v56 = vunpack.c.h.bf16 %v1010_v55  ;;  %v1011_v57 = vunpack.c.l.bf16 %v1010_v55  ;;  %v1115_v55 = vld [vmem:[#allocation7] sm:$0xff]  }
  0x38   :  { %1046 = vmatprep.subr.bf16.mxu0 %v1277_v0  ;;  %1108 = vset.pattern.permute.xlu0 %v1279_v4 }
  0x39   :  { %v1394_v21 = vsub.s32 0, %v1391_v18 }
  0x3a   :  { %1037 = vmatmul.mubr.msk.bf16.vlgmr.msra.gmra.mxu0 %vm105_vm2, %v1112_v3 }
  0x3b   :  { %1048 = vmatprep.mubr.msk.bf16.mxu0 %vm1278_vm0, %v1277_v0 }
  0xfa   :  { %v147_v5 = vpop.f32.mrf.mxu0 }
  0xfb   :  { %160 = vrot.lane.b32.xlu1 %v147_v5, %s1280_s23  ;;  %156 = vrot.lane.b32.xlu0 %v147_v5, %s1281_s24 }
  0xfc   :  { %v1038_v6 = vpop.f32.mrf.mxu0 }
  0xfe   :  { %v150_v7 = vpop.f32.mrf.mxu0 }
  0xff   :  { %198 = vrot.lane.b32.xlu1 %v147_v5, %s1282_s25  ;;  %158 = vrot.lane.b32.xlu0 %v150_v7, %s1281_s24  ;;  %v1387_v8 = vpack.c.bf16 %v150_v7, %v147_v5 }
 0x100   :  { %v1039_v9 = vpop.f32.mrf.mxu0 }
 0x101   :  { %1047 = vmatpush3.bf16.msra.mxu0 %v1387_v8 }
 0x102   :  { %1058 = vmatprep.subr.bf16.mxu0 %v1277_v0 }
 0x103   :  { %200 = vrot.lane.b32.xlu1 %v150_v7, %s1282_s25  ;;  %162 = vrot.lane.b32.xlu0 %v150_v7, %s1280_s23  ;;  %s1285_s23 = smov [#allocation11]  }
 0x104   :  { %s969_s24 = sshll.u32 %s1285_s23, 4  ;;  %s970_s24 = int_to_ptr.vmem [resolvable:$true] %s969_s24 }
 0x105   :  { %s1221_s25 = scalar_lea.vmem %s970_s24, 256  ;;  %p1226_p7 = scmp.lt.s32.totalorder %s970_s24, %s970_s24 }
 0x106   :  { %p1222_p6 = scmp.ne.s32.totalorder %s970_s24, %s1221_s25  ;;  %p1227_p8 = scmp.lt.s32.totalorder %s1221_s25, %s1221_s25 }
 0x107   :  { %241 = vperm.xlu1 %1109, %v150_v7   ;;  %237 = vperm.xlu0 %1108, %v147_v5  }
 0x108   :  { %p1228_p9 = por %p1227_p8, %p1226_p7 }
 0x10a   :  { %p1229_p10 = pnand %p1228_p9, %p1222_p6 }
 0x16d   :  { %v157_v10 = vpop.permute.xlu0 %156  ;;  %v161_v12 = vpop.permute.xlu1 %160 }
 0x16e   :  { %245 = vperm.xlu1 %1109, %v157_v10  }
 0x171   :  { %v159_v11 = vpop.permute.xlu0 %158  ;;  %v199_v13 = vpop.permute.xlu1 %198 }
 0x172   :  { %249 = vperm.xlu0 %1108, %v159_v11  }
 0x175   :  { %v201_v14 = vpop.permute.xlu1 %200  ;;  %v163_v15 = vpop.permute.xlu0 %162 }
 0x182   :  { %v238_v17 = vpop.permute.xlu0 %237  ;;  %v242_v20 = vpop.permute.xlu1 %241 }
 0x190   :  { %204 = vxpose.xlu0.b32.start [1/2] (short) (narrow) %v199_v13, 8 }
 0x194   :  { %205 = vxpose.xlu0.b32.end [2/2] (short) (narrow) %v201_v14, 8 }
 0x197   :  { %166 = vxpose.xlu1.b32.start [1/2] (short) (narrow) %v161_v12, 8 }
 0x19b   :  { %167 = vxpose.xlu1.b32.end [2/2] (short) (narrow) %v163_v15, 8 }
 0x1e9   :  { %v246_v23 = vpop.permute.xlu1 %245 }
 0x1ed   :  { %v250_v19 = vpop.permute.xlu0 %249 }
 0x20c   :  { %v220_v22 = vpop.trf.xlu0 }
 0x20d   :  { %v259_v24 = vrot.slane %v220_v22, %v1394_v21 }
 0x20f   :  { %v262_v25 = vadd.f32 %v259_v24, %v246_v23  ;;  %v263_v26 = vadd.f32 %v259_v24, %v250_v19  ;;  %v1113_v24 = vld [vmem:[#allocation5] sm:$0xff]  }
 0x211   :  { %v271_v31 = vmul.f32 0.2, %v263_v26  ;;  %v270_v32 = vmul.f32 0.2, %v262_v25  ;;  %vm267_vm5 = vcmp.gt.f32.partialorder %v263_v26, 0.0  ;;  %vm266_vm6 = vcmp.gt.f32.partialorder %v262_v25, 0.0 }
 0x213   :  { %v182_v27 = vpop.trf.xlu1  ;;  %v275_v39 = vsel %vm267_vm5, %v263_v26, %v271_v31  ;;  %v274_v40 = vsel %vm266_vm6, %v262_v25, %v270_v32  ;;  %v1422_v26 = vld [vmem:[%s1502_s9] sm:$0xff]  ;;  %v434_v32 = vsub.s32 1, %v1391_v18 }
 0x214   :  { %v255_v28 = vrot.slane %v182_v27, %v1394_v21  ;;  %v290_v41 = vsel %vm280_vm7, %v275_v39, -inf  ;;  %v287_v42 = vsel %vm280_vm7, %v274_v40, -inf }
 0x216   :  { %v260_v29 = vadd.f32 %v255_v28, %v238_v17  ;;  %v261_v30 = vadd.f32 %v255_v28, %v242_v20  ;;  %v427_v28 = vrot.slane %v1422_v26, %v1394_v21 }
 0x218   :  { %vm265_vm3 = vcmp.gt.f32.partialorder %v261_v30, 0.0  ;;  %v269_v33 = vmul.f32 0.2, %v261_v30  ;;  %vm264_vm4 = vcmp.gt.f32.partialorder %v260_v29, 0.0  ;;  %v268_v34 = vmul.f32 0.2, %v260_v29 }
 0x21a   :  { %v273_v35 = vsel %vm265_vm3, %v261_v30, %v269_v33  ;;  %v272_v36 = vsel %vm264_vm4, %v260_v29, %v268_v34 }
 0x21b   :  { %v284_v37 = vsel %vm280_vm7, %v273_v35, -inf  ;;  %v281_v38 = vsel %vm280_vm7, %v272_v36, -inf }
 0x21c   :  { %285 = vmax.xlane.f32.xlu1 %v284_v37  ;;  %282 = vmax.xlane.f32.xlu0 %v281_v38  ;;  %v435_v38 = vrot.slane %v1422_v26, %v434_v32  ;;  %v1118_v32 = vld [vmem:[%s1496_s3 + $0x4] ss:$8 sps:$4 sm:$0xff]  }
 0x220   :  { %291 = vmax.xlane.f32.xlu1 %v290_v41  ;;  %288 = vmax.xlane.f32.xlu0 %v287_v42 }
 0x2a5   :  { %v286_v43 = vpop.xlane.xlu1 %285  ;;  %v283_v44 = vpop.xlane.xlu0 %282 }
 0x2a6   :  { %v294_v45 = vsub.f32 %v273_v35, %v286_v43  ;;  %v293_v46 = vsub.f32 %v272_v36, %v283_v44 }
 0x2a8   :  { %v299_v47 = vmul.f32 1.442695, %v294_v45  ;;  %v297_v48 = vmul.f32 1.442695, %v293_v46 }
 0x2a9   :  { %v292_v49 = vpop.xlane.xlu1 %291  ;;  %v289_v50 = vpop.xlane.xlu0 %288 }
 0x2aa   :  { %1121 = vpow2.f32 %v299_v47  ;;  %v296_v51 = vsub.f32 %v275_v39, %v292_v49  ;;  %v295_v52 = vsub.f32 %v274_v40, %v289_v50  ;;  %v440_v39 = vsub.s32 2, %v1391_v18 }
 0x2ab   :  { %1123 = vpow2.f32 %v297_v48 }
 0x2ac   :  { %v303_v53 = vmul.f32 1.442695, %v296_v51  ;;  %v301_v54 = vmul.f32 1.442695, %v295_v52  ;;  %v441_v21 = vrot.slane %v1422_v26, %v440_v39  ;;  %v1119_v39 = vld [vmem:[#allocation8] sm:$0xff]  }
 0x2ae   :  { %1125 = vpow2.f32 %v303_v53 }
 0x2af   :  { %1127 = vpow2.f32 %v301_v54  ;;  %v1114_v54 = vld [vmem:[%s1494_s1 + $0x8] sm:$0xff]  }
 0x2b7   :  { %v1122_v58 = vpop.eup %1121 }
 0x2b8   :  { %v1124_v59 = vpop.eup %1123  ;;  %v306_v60 = vmul.f32 %v1122_v58, %v1012_v56  ;;  %v558_v58 = vsub.s32 4, %v1391_v18 }
 0x2b9   :  { %v305_v61 = vmul.f32 %v1124_v59, %v1011_v57 }
 0x2ba   :  { %v312_v62 = vsel %vm280_vm7, %v306_v60, 0.0 }
 0x2bb   :  { %v1126_v63 = vpop.eup %1125  ;;  %313 = vadd.xlane.f32.xlu1 %v312_v62  ;;  %v309_v1 = vsel %vm280_vm7, %v305_v61, 0.0 }
 0x2bc   :  { %v1128_v2 = vpop.eup %1127  ;;  %310 = vadd.xlane.f32.xlu0 %v309_v1  ;;  %v308_v3 = vmul.f32 %v1126_v63, %v1012_v56  ;;  %v503_v56 = vsub.s32 3, %v1391_v18  ;;  %v559_v63 = vrot.slane %v1422_v26, %v558_v58  ;;  %v564_v1 = vsub.s32 5, %v1391_v18 }
 0x2bd   :  { %v307_v4 = vmul.f32 %v1128_v2, %v1011_v57 }
 0x2be   :  { %v318_v5 = vsel %vm280_vm7, %v308_v3, 0.0  ;;  %v504_v57 = vrot.slane %v1422_v26, %v503_v56 }
 0x2bf   :  { %319 = vadd.xlane.f32.xlu1 %v318_v5  ;;  %v315_v6 = vsel %vm280_vm7, %v307_v4, 0.0 }
 0x2c0   :  { %316 = vadd.xlane.f32.xlu0 %v315_v6  ;;  %v565_v6 = vrot.slane %v1422_v26, %v564_v1 }
 0x2d6   :  { %333 = vrot.lane.b32.xlu0 %v1387_v8, %s1283_s27 }
 0x344   :  { %v314_v7 = vpop.xlane.xlu1 %313 }
 0x345   :  { %1129 = vrcp.f32 %v314_v7  ;;  %v311_v9 = vpop.xlane.xlu0 %310 }
 0x346   :  { %1131 = vrcp.f32 %v311_v9 }
 0x348   :  { %v320_v10 = vpop.xlane.xlu1 %319 }
 0x349   :  { %1133 = vrcp.f32 %v320_v10  ;;  %v317_v11 = vpop.xlane.xlu0 %316 }
 0x34a   :  { %1135 = vrcp.f32 %v317_v11 }
 0x34d   :  { %v334_v12 = vpop.permute.xlu0 %333 }
 0x34e   :  { %1041 = vmatpush3.bf16.msra.mxu1 %v334_v12 }
 0x34f   :  { %1052 = vmatprep.subr.bf16.mxu1 %v1277_v0 }
 0x352   :  { %v1130_v13 = vpop.eup %1129 }
 0x353   :  { %v1132_v14 = vpop.eup %1131  ;;  %v326_v15 = vmul.f32 %v1130_v13, %v306_v60  ;;  %v573_v13 = vsub.s32 6, %v1391_v18 }
 0x354   :  { %v325_v16 = vmul.f32 %v1132_v14, %v305_v61 }
 0x355   :  { %v574_v14 = vrot.slane %v1422_v26, %v573_v13 }
 0x356   :  { %v1134_v17 = vpop.eup %1133  ;;  %v329_v19 = vpack.c.bf16 %v326_v15, %v325_v16 }
 0x357   :  { %v1136_v20 = vpop.eup %1135  ;;  %v328_v8 = vmul.f32 %v1134_v17, %v308_v3 }
 0x358   :  { %1049 = vmatmul.mubr.msk.bf16.vlgmr.msra.gmra.mxu0 %vm280_vm7, %v329_v19  ;;  %v327_v22 = vmul.f32 %v1136_v20, %v307_v4 }
 0x359   :  { %1060 = vmatprep.mubr.msk.bf16.mxu0 %vm1278_vm0, %v1277_v0 }
 0x35a   :  { %v330_v23 = vpack.c.bf16 %v328_v8, %v327_v22 }
 0x35c   :  { %1043 = vmatmul.mubr.msk.bf16.vlgmr.msra.gmra.mxu1 %vm280_vm7, %v330_v23 }
 0x35d   :  { %1054 = vmatprep.mubr.msk.bf16.mxu1 %vm1278_vm0, %v1277_v0  ;;  %1053 = vmatpush3.bf16.msra.mxu1 %v1113_v24 }
 0x35e   :  { %1064 = vmatprep.subr.bf16.mxu1 %v1277_v0 }
 0x418   :  { %v417_v25 = vpop.f32.mrf.mxu0 }
 0x41a   :  { %v1050_v27 = vpop.f32.mrf.mxu0 }
 0x41c   :  { %v373_v29 = vpop.f32.mrf.mxu1  ;;  %v420_v30 = vpop.f32.mrf.mxu0 }
 0x41d   :  { %v418_v31 = vadd.f32 %v417_v25, %v373_v29 }
 0x41e   :  { %v1044_v33 = vpop.f32.mrf.mxu1  ;;  %v1051_v34 = vpop.f32.mrf.mxu0 }
 0x41f   :  { %v428_v35 = vadd.f32 %v427_v28, %v418_v31  ;;  %v1116_v31 = vld [vmem:[%s1496_s3] ss:$8 sps:$4 sm:$0xff]  }
 0x420   :  { %v376_v36 = vpop.f32.mrf.mxu1  ;;  %v628_v33 = vld [vmem:[%s1495_s2 + $0x8] sm:$0xff] }
 0x421   :  { %v430_v37 = vmax.f32 %v428_v35, 0.0  ;;  %v421_v40 = vadd.f32 %v420_v30, %v376_v36 }
 0x422   :  { %v1045_v41 = vpop.f32.mrf.mxu1 }
 0x423   :  { %v429_v42 = vadd.f32 %v427_v28, %v421_v40  ;;  %v436_v43 = vmul.f32 %v435_v38, %v430_v37  ;;  %v627_v28 = vld [vmem:[%s1495_s2] sm:$0xff] }
 0x424   :  { %v1120_v40 = vld [vmem:[#allocation8 + $0x8] sm:$0xff]  }
 0x425   :  { %v431_v44 = vmax.f32 %v429_v42, 0.0  ;;  %v442_v46 = vadd.f32 %v441_v21, %v436_v43 }
 0x427   :  { %v437_v45 = vmul.f32 %v435_v38, %v431_v44  ;;  %v1284_v38 = vmov 0   ;;  %v870_v44 = vld [vmem:[%s1503_s10 + $0x10] sm:$0xff] }
 0x428   :  { %1110 = vset.pattern.permute.xlu1 %v1284_v38 }
 0x429   :  { %v443_v47 = vadd.f32 %v441_v21, %v437_v45  ;;  %v871_v45 = vld [vmem:[%s1503_s10 + $0x18] sm:$0xff] }
 0x42b   :  { %v444_v48 = vpack.c.bf16 %v443_v47, %v442_v46  ;;  %v868_v46 = vld [vmem:[%s1503_s10] sm:$0xff]  ;;  %v869_v47 = vld [vmem:[%s1503_s10 + $0x8] sm:$0xff] }
 0x42d   :  { %1055 = vmatmul.mubr.msk.bf16.vlgmr.msra.gmra.mxu1 %vm280_vm7, %v444_v48 }
 0x42e   :  { %1066 = vmatprep.mubr.msk.bf16.mxu1 %vm1278_vm0, %v1277_v0  ;;  %1065 = vmatpush3.bf16.msra.mxu1 %v1115_v55 }
 0x4ed   :  { %v490_v49 = vpop.f32.mrf.mxu1 }
 0x4ef   :  { %v1056_v50 = vpop.f32.mrf.mxu1 }
 0x4f1   :  { %v493_v51 = vpop.f32.mrf.mxu1 }
 0x4f2   :  { %v500_v52 = vpack.c.bf16 %v493_v51, %v490_v49 }
 0x4f3   :  { %v1057_v53 = vpop.f32.mrf.mxu1 }
 0x4f4   :  { %1059 = vmatpush3.bf16.msra.mxu0 %v500_v52 }
 0x4f5   :  { %709 = vmatprep.subr.bf16.mxu0 %v1118_v32 }
 0x4f7   :  { %1061 = vmatmul.mubr.msk.bf16.vlgmr.msra.gmra.mxu0 %vm280_vm7, %v1114_v54 }
 0x4f8   :  { %710 = vmatpush1.bf16.msra.mxu0 %v1116_v31  ;;  %727 = vmatprep.mubr.bf16.mxu0 %v1284_v38 }
 0x5b7   :  { %v547_v59 = vpop.f32.mrf.mxu0 }
 0x5b8   :  { %v548_v60 = vadd.f32 %v547_v59, %v504_v57 }
 0x5b9   :  { %v1062_v61 = vpop.f32.mrf.mxu0 }
 0x5ba   :  { %v554_v62 = vmax.f32 %v548_v60, 0.0 }
 0x5bb   :  { %v550_v2 = vpop.f32.mrf.mxu0 }
 0x5bc   :  { %v551_v3 = vadd.f32 %v550_v2, %v504_v57  ;;  %v560_v5 = vmul.f32 %v559_v63, %v554_v62 }
 0x5bd   :  { %v1063_v4 = vpop.f32.mrf.mxu0 }
 0x5be   :  { %v555_v7 = vmax.f32 %v551_v3, 0.0  ;;  %v566_v10 = vadd.f32 %v565_v6, %v560_v5 }
 0x5c0   :  { %v561_v9 = vmul.f32 %v559_v63, %v555_v7 }
 0x5c2   :  { %v567_v11 = vadd.f32 %v565_v6, %v561_v9 }
 0x5c4   :  { %v568_v12 = vpack.c.bf16 %v567_v11, %v566_v10 }
 0x5c6   :  { %1067 = vmatmul.mubr.msk.bf16.vlgmr.msra.gmra.mxu1 %vm280_vm7, %v568_v12 }
 0x686   :  { %v618_v15 = vpop.f32.mrf.mxu1 }
 0x687   :  { %v619_v16 = vadd.f32 %v618_v15, %v574_v14 }
 0x688   :  { %v1068_v17 = vpop.f32.mrf.mxu1 }
 0x689   :  { %625 = vst [vmem:[#allocation11] sm:$0xff] %v619_v16  ;;  %v629_v19 = vmul.f32 0.5, %v619_v16 }
 0x68a   :  { %v621_v20 = vpop.f32.mrf.mxu1 }
 0x68b   :  { %v631_v8 = vmul.f32 1.442695, %v629_v19  ;;  %v622_v22 = vadd.f32 %v621_v20, %v574_v14  ;;  %v900_v19 = vld [vmem:[%s1501_s8] sm:$0x1] }
 0x68c   :  { %v1069_v23 = vpop.f32.mrf.mxu1 }
 0x68d   :  { %1137 = vpow2.f32 %v631_v8  ;;  %626 = vst [vmem:[#allocation11 + $0x8] sm:$0xff] %v622_v22  ;;  %v630_v24 = vmul.f32 0.5, %v622_v22 }
 0x68f   :  { %v633_v25 = vmul.f32 1.442695, %v630_v24 }
 0x691   :  { %1139 = vpow2.f32 %v633_v25 }
 0x69a   :  { %v1138_v27 = vpop.eup %1137 }
 0x69b   :  { %637 = vrot.lane.b32.xlu1 %v1138_v27, %s1283_s27 }
 0x69e   :  { %v1140_v18 = vpop.eup %1139 }
 0x69f   :  { %639 = vrot.lane.b32.xlu1 %v1140_v18, %s1283_s27 }
 0x6a3   :  { %754 = vrot.lane.b32.xlu1 %v1119_v39, %s1283_s27 }
 0x6a7   :  { %756 = vrot.lane.b32.xlu1 %v1120_v40, %s1283_s27 }
 0x6ab   :  { %884 = vperm.xlu1 %1110, %v870_v44  }
 0x6af   :  { %889 = vperm.xlu1 %1110, %v871_v45  }
 0x6b3   :  { %874 = vperm.xlu1 %1110, %v868_v46  }
 0x6b7   :  { %879 = vperm.xlu1 %1110, %v869_v47  }
 0x6bb   :  { %905 = vperm.xlu1 %1110, %v1422_v26  }
 0x70d   :  { %v638_v29 = vpop.permute.xlu1 %637 }
 0x70e   :  { %v643_v30 = vmul.f32 %v638_v29, %v627_v28 }
 0x710   :  { %v645_v34 = vadd.f32 %v643_v30, %v619_v16 }
 0x711   :  { %v640_v35 = vpop.permute.xlu1 %639 }
 0x712   :  { %v644_v36 = vmul.f32 %v640_v35, %v628_v33  ;;  %647 = vxpose.xlu0.b32.start [1/2] (short) (narrow) %v645_v34, 16 }
 0x714   :  { %v646_v37 = vadd.f32 %v644_v36, %v622_v22 }
 0x715   :  { %v755_v21 = vpop.permute.xlu1 %754 }
 0x716   :  { %648 = vxpose.xlu0.b32.end [2/2] (short) (narrow) %v646_v37, 16  ;;  %1072 = vmatprep.mubr.msk.bf16.mxu1 %vm280_vm7, %v755_v21 }
 0x719   :  { %v757_v54 = vpop.permute.xlu1 %756 }
 0x726   :  { %v885_v26 = vpop.permute.xlu1 %884 }
 0x72a   :  { %v890_v55 = vpop.permute.xlu1 %889 }
 0x72e   :  { %v875_v59 = vpop.permute.xlu1 %874 }
 0x732   :  { %v880_v9 = vpop.permute.xlu1 %879 }
 0x73f   :  { %1111 = vset.pattern.permute.xlu0 %v1284_v38 }
 0x78e   :  { %v663_v41 = vpop.trf.xlu0 }
 0x792   :  { %v664_v42 = vpop.trf.xlu0 }
 0x793   :  { %v679_v43 = vpack.c.bf16 %v664_v42, %v663_v41 }
 0x795   :  { %1001 = vmatmul.mubr.msk.bf16.vlgmr.msra.gmra.mxu0 %vm280_vm7, %v679_v43 }
 0x796   :  { %1078 = vmatprep.mubr.msk.bf16.mxu0 %vm280_vm7, %v1119_v39 }
 0x855   :  { %v729_v48 = vpop.f32.mrf.mxu0 }
 0x857   :  { %v731_v49 = vpop.f32.mrf.mxu0 }
 0x859   :  { %v733_v50 = vpop.f32.mrf.mxu0 }
 0x85a   :  { %v742_v51 = vpack.c.bf16 %v733_v50, %v729_v48 }
 0x85b   :  { %v735_v52 = vpop.f32.mrf.mxu0 }
 0x85c   :  { %v743_v53 = vpack.c.bf16 %v735_v52, %v731_v49  ;;  %1076 = vmatprep.subr.bf16.mxu0 %v742_v51 }
 0x85d   :  { %1077 = vmatpush3.bf16.msra.mxu0 %v742_v51 }
 0x85e   :  { %1070 = vmatprep.subr.bf16.mxu1 %v743_v53 }
 0x85f   :  { %1071 = vmatpush3.bf16.msra.mxu1 %v743_v53 }
 0x860   :  { %1079 = vmatmul.mubr.msk.bf16.vlgmr.msra.gmra.mxu0 %vm280_vm7, %v1120_v40  ;;  %1082 = vmatprep.subr.bf16.mxu1 %v1277_v0 }
 0x862   :  { %1073 = vmatmul.mubr.msk.bf16.vlgmr.msra.gmra.mxu1 %vm280_vm7, %v757_v54 }
 0x863   :  { %1086 = vmatprep.mubr.msk.bf16.mxu1 %vm1278_vm0, %v1277_v0 }
 0x920   :  { %v1080_v56 = vpop.f32.mrf.mxu0 }
 0x922   :  { %v1074_v57 = vpop.f32.mrf.mxu1  ;;  %v853_v58 = vpop.f32.mrf.mxu0 }
 0x923   :  { %v862_v60 = vadd.f32 %v1080_v56, %v1074_v57 }
 0x924   :  { %v1081_v61 = vpop.f32.mrf.mxu0  ;;  %v798_v62 = vpop.f32.mrf.mxu1 }
 0x925   :  { %v894_v1 = vadd.f32 %v885_v26, %v862_v60  ;;  %v854_v2 = vadd.f32 %v853_v58, %v798_v62 }
 0x926   :  { %v1075_v63 = vpop.f32.mrf.mxu1  ;;  %v856_v4 = vpop.f32.mrf.mxu0 }
 0x927   :  { %v865_v3 = vadd.f32 %v1081_v61, %v1075_v63  ;;  %v898_v10 = vmax.f32 %v894_v1, 0.0  ;;  %v892_v11 = vadd.f32 %v875_v59, %v854_v2 }
 0x928   :  { %v801_v5 = vpop.f32.mrf.mxu1 }
 0x929   :  { %v895_v6 = vadd.f32 %v890_v55, %v865_v3  ;;  %v857_v7 = vadd.f32 %v856_v4, %v801_v5  ;;  %v896_v16 = vmax.f32 %v892_v11, 0.0 }
 0x92b   :  { %v899_v12 = vmax.f32 %v895_v6, 0.0  ;;  %v893_v13 = vadd.f32 %v880_v9, %v857_v7 }
 0x92d   :  { %v902_v14 = vpack.c.bf16 %v899_v12, %v898_v10  ;;  %v897_v15 = vmax.f32 %v893_v13, 0.0 }
 0x92f   :  { %1083 = vmatpush3.bf16.msra.mxu1 %v902_v14  ;;  %v901_v17 = vpack.c.bf16 %v897_v15, %v896_v16 }
 0x930   :  { %1084 = vmatprep.subr.bf16.mxu1 %v1277_v0 }
 0x933   :  { %1085 = vmatpush3.bf16.msra.mxu1 %v901_v17 }
 0x936   :  { %1087 = vmatmul.mubr.msk.bf16.vlgmr.msra.gmra.mxu1 %vm909_vm8, %v900_v19 }
 0x937   :  { %1232 = shalt.err (!%p1229_p10)
}
 0x938   :  { %s1286_s0 = smov 128   ;;  %s1287_s26 = smov 8   ;;  %v906_v0 = vpop.permute.xlu1 %905 }
 0x939   :  { %975 = dma.vmem_to_hbm [thread:$0]  %s970_s24, 256, %s1505_s12, [#allocation12], %s1286_s0, %s1286_s0, %s1287_s26   ;;  %v907_v20 = vrot.slane %v906_v0, 7 }
 0x93a   :  { %s1288_s8 = smov [#allocation10]  }
 0x93b   :  { %s960_s29 = sshll.u32 %s1288_s8, 4  ;;  %s961_s29 = int_to_ptr.vmem [resolvable:$true] %s960_s29 }
 0x93c   :  { %s1241_s9 = scalar_lea.vmem %s961_s29, 16  ;;  %s1245_s30 = scalar_lea.vmem %s961_s29, 32 }
 0x93d   :  { %p1242_p11 = scmp.ne.s32.totalorder %s961_s29, %s1241_s9  ;;  %p1246_p12 = scmp.lt.s32.totalorder %s961_s29, %s961_s29 }
 0x93e   :  { %p1247_p13 = scmp.lt.s32.totalorder %s1245_s30, %s1241_s9 }
 0x940   :  { %p1248_p0 = por %p1247_p13, %p1246_p12 }
 0x942   :  { %p1249_p1 = pnand %p1248_p0, %p1242_p11 }
 0x9f6   :  { %v947_v8 = vpop.f32.mrf.mxu1 }
 0x9f7   :  { %v948_v22 = vadd.f32 %v947_v8, %v907_v20 }
 0x9f8   :  { %v1088_v23 = vpop.f32.mrf.mxu1 }
 0x9f9   :  { %953 = vst [vmem:[#allocation10] sm:$0x1] %v948_v22 }
 0x9fa   :  { %v950_v24 = vpop.f32.mrf.mxu1 }
 0x9fb   :  { %1252 = shalt.err (!%p1249_p1)
}
 0x9fc   :  { %963 = dma.vmem_to_hbm [thread:$0]  %s961_s29, 16, %s1504_s11, [#allocation4]   ;;  %v1089_v25 = vpop.f32.mrf.mxu1 }
 0x9fd   :  { %1267 = dma.done.wait [#allocation4], 16  }
 0x9fe   :  { %1268 = vsyncadd [#allocation4], 4294967280 }
 0x9ff   :  { %1269 = dma.done.wait [#allocation12], 256  }
 0xa00   :  { %1270 = vsyncadd [#allocation12], 4294967040 }
 0xa01   :  { %982 = vsyncpa [#allocation3], 1 }
 0xa02   :  { %983 = vsyncpa [#allocation6], 1 }
 0xa03   :  { %984 = vsyncpa [#allocation9], 1 }
 0xa04   :  { %985 = vsyncpa [#allocation4], 1 }
 0xa05   :  { %986 = vsyncpa [#allocation12], 1 }

</bundles_post_ra>
